<compile_context>
chip_gen: v7x
topology: tpu7x:2x2x1
jax: 0.10.0
libtpu: 0.0.40
codegen_flags: <defaults>
</compile_context>

<pallas_src>
import jax
import jax.numpy as jnp
from jax.experimental import pallas as pl
from jax.experimental.pallas import tpu as pltpu

EPS = 1e-12  # F.normalize default eps


def _normed_linear_kernel(x_ref, w_ref, o_ref):
    # x_ref: (tm, K)   row-tile of x        (K = in_features, whole per tile)
    # w_ref: (K, tn)   column-tile of weight
    # o_ref: (tm, tn)  output tile (lane-dense: tn % 128 == 0 or tn == N)
    x = x_ref[...]
    w = w_ref[...]

    # Single-pass sum-of-squares for the L2 norms.
    # 1/max(||v||, eps) == rsqrt(max(sum(v^2), eps^2))  -> EUP rsqrt.
    inv_row = jax.lax.rsqrt(
        jnp.maximum(jnp.sum(x * x, axis=1, keepdims=True), EPS * EPS))  # (tm, 1)
    inv_col = jax.lax.rsqrt(
        jnp.maximum(jnp.sum(w * w, axis=0, keepdims=True), EPS * EPS))  # (1, tn)

    # One un-normalized matmul on the MXU, f32 accumulation.
    acc = jnp.dot(x, w, preferred_element_type=jnp.float32)             # (tm, tn)

    # Apply the row/column reciprocal-norm scales on the small output tile.
    o_ref[...] = (acc * inv_row * inv_col).astype(o_ref.dtype)


def _pick_tile(dim, target, align):
    """Tile size: full dim if it already fits the target, else the largest
    `align`-aligned size <= target (grid then uses cdiv; Pallas pads the
    ragged edge block).  Always satisfies the (8, 128) BlockSpec rule."""
    if dim <= target:
        return dim
    return max(align, (target // align) * align)


def normed_linear_pallas(x, weight, *, tm_target=256, tn_target=512):
    """x: (M, K) f32, weight: (K, N) f32 -> (M, N) f32."""
    M, K = x.shape
    K2, N = weight.shape
    assert K == K2, (x.shape, weight.shape)

    tm = _pick_tile(M, tm_target, 8)     # sublane axis: multiple of 8 or full M
    tn = _pick_tile(N, tn_target, 128)   # lane axis:    multiple of 128 or full N
    grid = (pl.cdiv(M, tm), pl.cdiv(N, tn))

    # TODO(synk): for very large in_features, tile K as an "arbitrary" reduction
    # grid axis with VMEM accumulators for both the partial matmul and the
    # partial sum-of-squares norms (P3 pattern); here K is kept whole per tile.
    return pl.pallas_call(
        _normed_linear_kernel,
        out_shape=jax.ShapeDtypeStruct((M, N), x.dtype),
        grid_spec=pltpu.PrefetchScalarGridSpec(
            num_scalar_prefetch=0,
            grid=grid,
            in_specs=[
                pl.BlockSpec((tm, K), lambda i, j: (i, 0)),   # x row-block
                pl.BlockSpec((K, tn), lambda i, j: (0, j)),   # w col-block
            ],
            out_specs=pl.BlockSpec((tm, tn), lambda i, j: (i, j)),
        ),
        compiler_params=pltpu.CompilerParams(
            dimension_semantics=("parallel", "parallel"),
        ),
    )(x, weight)


def _reference(x, weight):
    """Pure-JAX reference matching PyTorch NormedLinear.forward."""
    xn = x / jnp.maximum(
        jnp.sqrt(jnp.sum(x * x, axis=1, keepdims=True)), EPS)
    wn = weight / jnp.maximum(
        jnp.sqrt(jnp.sum(weight * weight, axis=0, keepdims=True)), EPS)
    return jnp.dot(xn, wn, precision=jax.lax.Precision.HIGHEST)


def _make_inputs(key, M, K, N):
    kx, kw = jax.random.split(key, 2)
    x = jax.random.normal(kx, (M, K), jnp.float32)
    # Mimic __init__: uniform(-1, 1), each column renormed to ~unit L2 norm
    # (renorm_(2, 1, 1e-5).mul_(1e5) leaves every column with norm ~1).
    w = jax.random.uniform(kw, (K, N), jnp.float32, minval=-1.0, maxval=1.0)
    w = w / jnp.maximum(jnp.linalg.norm(w, axis=0, keepdims=True), 1e-5)
    return x, w


if __name__ == "__main__":
    key = jax.random.PRNGKey(0)
    k0, k1 = jax.random.split(key, 2)

    # Case 1: NormedLinear(in_features=32, out_features=256), batch of 16.
    x, w = _make_inputs(k0, 16, 32, 256)
    out = jax.block_until_ready(normed_linear_pallas(x, w))
    ref = _reference(x, w)
    assert out.shape == ref.shape
    assert jnp.allclose(out, ref, atol=1e-4, rtol=1e-4), \
        f"case1 max abs err {jnp.max(jnp.abs(out - ref))}"

    # Case 2: ragged M / N (exercise the cdiv grid + padded edge blocks) with
    # forced small tiles so the edge path is actually taken.
    x2, w2 = _make_inputs(k1, 20, 24, 300)
    out2 = jax.block_until_ready(
        normed_linear_pallas(x2, w2, tm_target=8, tn_target=128))
    ref2 = _reference(x2, w2)
    assert out2.shape == ref2.shape
    assert jnp.allclose(out2, ref2, atol=1e-4, rtol=1e-4), \
        f"case2 max abs err {jnp.max(jnp.abs(out2 - ref2))}"

    print("KERNEL_OK")
</pallas_src>

<mosaic_0001>
module attributes {stable_mosaic.version = 11 : i64} {
  func.func @_normed_linear_kernel(%arg0: i32, %arg1: i32, %arg2: memref<16x32xf32, #tpu.memory_space<vmem>>, %arg3: memref<32x256xf32, #tpu.memory_space<vmem>>, %arg4: memref<16x256xf32, #tpu.memory_space<vmem>>) attributes {dimension_semantics = [#tpu.dimension_semantics<parallel>, #tpu.dimension_semantics<parallel>], iteration_bounds = array<i64: 1, 1>, scalar_prefetch = 0 : i64, scratch_operands = 0 : i64, tpu.core_type = #tpu.core_type<tc>, window_params = [{transform_indices = @transform_0, window_bounds = array<i64: 16, 32>}, {transform_indices = @transform_1, window_bounds = array<i64: 32, 256>}, {transform_indices = @transform_2, window_bounds = array<i64: 16, 256>}]} {
    %c0 = arith.constant 0 : index
    %c0_0 = arith.constant 0 : index
    %0 = vector.load %arg2[%c0, %c0_0] : memref<16x32xf32, #tpu.memory_space<vmem>>, vector<16x32xf32>
    %c0_1 = arith.constant 0 : index
    %c0_2 = arith.constant 0 : index
    %1 = vector.load %arg3[%c0_1, %c0_2] : memref<32x256xf32, #tpu.memory_space<vmem>>, vector<32x256xf32>
    %2 = arith.mulf %0, %0 : vector<16x32xf32>
    %cst = arith.constant dense<0.000000e+00> : vector<16xf32>
    %3 = vector.multi_reduction <add>, %2, %cst [1] : vector<16x32xf32> to vector<16xf32>
    %4 = vector.shape_cast %3 : vector<16xf32> to vector<16x1xf32>
    %cst_3 = arith.constant 1.000000e-24 : f32
    %5 = vector.broadcast %cst_3 : f32 to vector<16x1xf32>
    %6 = arith.maximumf %4, %5 : vector<16x1xf32>
    %7 = math.rsqrt %6 : vector<16x1xf32>
    %8 = arith.mulf %1, %1 : vector<32x256xf32>
    %cst_4 = arith.constant dense<0.000000e+00> : vector<256xf32>
    %9 = vector.multi_reduction <add>, %8, %cst_4 [0] : vector<32x256xf32> to vector<256xf32>
    %10 = vector.shape_cast %9 : vector<256xf32> to vector<1x256xf32>
    %cst_5 = arith.constant 1.000000e-24 : f32
    %11 = vector.broadcast %cst_5 : f32 to vector<1x256xf32>
    %12 = arith.maximumf %10, %11 : vector<1x256xf32>
    %13 = math.rsqrt %12 : vector<1x256xf32>
    %cst_6 = arith.constant dense<0.000000e+00> : vector<16x256xf32>
    %14 = tpu.matmul %0, %1, %cst_6 {dimension_numbers = #tpu.dot_dimension_numbers<[1], [0], [0], [1], [0, 0, 1, 1], [], []>} : vector<16x32xf32>, vector<32x256xf32>, vector<16x256xf32> -> vector<16x256xf32>
    %15 = vector.broadcast %7 : vector<16x1xf32> to vector<16x256xf32>
    %16 = arith.mulf %14, %15 : vector<16x256xf32>
    %17 = vector.broadcast %13 : vector<1x256xf32> to vector<16x256xf32>
    %18 = arith.mulf %16, %17 : vector<16x256xf32>
    %c0_7 = arith.constant 0 : index
    %c0_8 = arith.constant 0 : index
    %19 = vector.load %arg4[%c0_7, %c0_8] : memref<16x256xf32, #tpu.memory_space<vmem>>, vector<16x256xf32>
    tpu.vector_store %arg4[%c0_7, %c0_8], %18 {strides = array<i32>} : memref<16x256xf32, #tpu.memory_space<vmem>>, vector<16x256xf32>,
    return
  }
  func.func @transform_0(%arg0: i32, %arg1: i32) -> (i32, i32) {
    %c0_i32 = arith.constant 0 : i32
    %c0_i32_0 = arith.constant 0 : i32
    return %arg0, %c0_i32 : i32, i32
  }
  func.func @transform_1(%arg0: i32, %arg1: i32) -> (i32, i32) {
    %c0_i32 = arith.constant 0 : i32
    %c0_i32_0 = arith.constant 0 : i32
    return %c0_i32, %arg1 : i32, i32
  }
  func.func @transform_2(%arg0: i32, %arg1: i32) -> (i32, i32) {
    %c0_i32 = arith.constant 0 : i32
    return %arg0, %arg1 : i32, i32
  }
}

</mosaic_0001>

<bundles_post_ra>
// kernel: tpu_custom_call.1
= control target key start
LH: loop header
LB: loop body
LE: loop exit
PB: predicated region body
PF: predicated region fallthrough
CT: control target
= control target key end

     0   :  { %7 = vsyncpa [#allocation3], 0  ;;  %s373_s0 = inlined_call_operand.hbm [shape: f32[16,32], index: 0, kind: input, shape index: {}]   ;;  %s374_s1 = inlined_call_operand.hbm [shape: f32[32,256], index: 1, kind: input, shape index: {}]   ;;  %s375_s2 = inlined_call_operand.hbm [shape: f32[16,256], index: 2, kind: output, shape index: {}]  }
   0x1   :  { %8 = vsyncpa [#allocation6], 0 }
   0x2   :  { %9 = vsyncpa [#allocation4], 0  ;;  %s308_s9 = smov [#allocation2]   ;;  %s236_s13 = scalar_lea.hbm %s373_s0, 256 }
   0x3   :  { %s15_s10 = sshll.u32 %s308_s9, 4  ;;  %p237_p0 = scmp.ne.s32.totalorder %s373_s0, %s236_s13  ;;  %s16_s10 = int_to_ptr.vmem [resolvable:$true] %s15_s10 }
   0x4   :  { %p240_p1 = scmp.lt.u32.totalorder %s236_s13, %s373_s0 }
   0x6   :  { %p242_p2 = pnand %p240_p1, %p237_p0 }
   0x8   :  { %245 = shalt.err (!%p242_p2)
}
   0x9   :  { %s246_s18 = scalar_lea.vmem %s16_s10, 256  ;;  %p251_p4 = scmp.lt.s32.totalorder %s16_s10, %s16_s10 }
   0xa   :  { %p247_p3 = scmp.ne.s32.totalorder %s16_s10, %s246_s18  ;;  %p252_p5 = scmp.lt.s32.totalorder %s246_s18, %s246_s18 }
   0xc   :  { %p253_p6 = por %p252_p5, %p251_p4 }
   0xe   :  { %p254_p7 = pnand %p253_p6, %p247_p3 }
  0x10   :  { %257 = shalt.err (!%p254_p7)
}
  0x11   :  { %s309_s19 = smov 128   ;;  %s310_s20 = smov 8  }
  0x12   :  { %21 = dma.hbm_to_vmem [thread:$0]  %s373_s0, 256, %s16_s10, [#allocation3], %s309_s19, %s309_s19, %s310_s20  }
  0x13   :  { %s311_s23 = smov [#allocation5]   ;;  %s258_s27 = scalar_lea.hbm %s374_s1, 1024 }
  0x14   :  { %s27_s24 = sshll.u32 %s311_s23, 4  ;;  %p259_p8 = scmp.ne.s32.totalorder %s374_s1, %s258_s27  ;;  %s28_s24 = int_to_ptr.vmem [resolvable:$true] %s27_s24 }
  0x15   :  { %p262_p9 = scmp.lt.u32.totalorder %s258_s27, %s374_s1 }
  0x17   :  { %p264_p10 = pnand %p262_p9, %p259_p8 }
  0x19   :  { %267 = shalt.err (!%p264_p10)
}
  0x1a   :  { %s268_s4 = scalar_lea.vmem %s28_s24, 1024  ;;  %p273_p12 = scmp.lt.s32.totalorder %s28_s24, %s28_s24 }
  0x1b   :  { %p269_p11 = scmp.ne.s32.totalorder %s28_s24, %s268_s4  ;;  %p274_p13 = scmp.lt.s32.totalorder %s268_s4, %s268_s4 }
  0x1d   :  { %p275_p0 = por %p274_p13, %p273_p12 }
  0x1f   :  { %p276_p1 = pnand %p275_p0, %p269_p11 }
  0x21   :  { %279 = shalt.err (!%p276_p1)
}
  0x22   :  { %s312_s0 = smov 256   ;;  %s313_s5 = smov 16  }
  0x23   :  { %33 = dma.hbm_to_vmem [thread:$0]  %s374_s1, 1024, %s28_s24, [#allocation6], %s312_s0, %s312_s0, %s313_s5  }
  0x24   :  { %302 = dma.done.wait [#allocation3], 256  }
  0x25   :  { %303 = vsyncadd [#allocation3], 4294967040 }
  0x26   :  { %304 = dma.done.wait [#allocation6], 1024  }
  0x27   :  { %305 = vsyncadd [#allocation6], 4294966272  ;;  %v314_v0 = vmov 0.0   ;;  %v43_v1 = vld [vmem:[#allocation5 + $0x8] sm:$0xff]  ;;  %v45_v2 = vld [vmem:[#allocation5 + $0x18] sm:$0xff]  ;;  %vm52_vm0 = vcmask 261120  }
  0x28   :  { %163 = vmatprep.mubr.f32.mxu0 %v314_v0  ;;  %169 = vmatprep.mubr.f32.mxu1 %v314_v0  ;;  %v42_v3 = vld [vmem:[#allocation5] sm:$0xff]  ;;  %v64_v4 = vmul.f32 %v43_v1, %v43_v1  ;;  %v66_v5 = vmul.f32 %v45_v2, %v45_v2  ;;  %v208_v6 = vpack.c.bf16 %v45_v2, %v43_v1  ;;  %v44_v7 = vld [vmem:[#allocation5 + $0x10] sm:$0xff]  ;;  %v47_v9 = vld [vmem:[#allocation5 + $0x28] sm:$0xff]  ;;  %s315_s1 = smov [#allocation7]  }
  0x29   :  { %v63_v8 = vmul.f32 %v42_v3, %v42_v3  ;;  %v49_v10 = vld [vmem:[#allocation5 + $0x38] sm:$0xff]  ;;  %v65_v11 = vmul.f32 %v44_v7, %v44_v7  ;;  %v210_v12 = vpack.c.bf16 %v44_v7, %v42_v3  ;;  %v68_v13 = vmul.f32 %v47_v9, %v47_v9  ;;  %v46_v15 = vld [vmem:[#allocation5 + $0x20] sm:$0xff]  ;;  %v48_v16 = vld [vmem:[#allocation5 + $0x30] sm:$0xff]  ;;  %s193_s8 = sshll.u32 %s315_s1, 4  ;;  %s194_s8 = int_to_ptr.vmem [resolvable:$true] %s193_s8 }
  0x2a   :  { %v70_v14 = vmul.f32 %v49_v10, %v49_v10  ;;  %v80_v17 = vadd.f32 %v66_v5, %v64_v4  ;;  %209 = vmatprep.subr.bf16.mxu0 %v208_v6  ;;  %216 = vmatprep.subr.bf16.mxu1 %v208_v6  ;;  %v212_v18 = vpack.c.bf16 %v49_v10, %v47_v9  ;;  %v40_v23 = vld [vmem:[#allocation2] sm:$0xff]  ;;  %v41_v25 = vld [vmem:[#allocation2 + $0x8] sm:$0xff]  ;;  %s280_s9 = scalar_lea.vmem %s194_s8, 512  ;;  %p285_p3 = scmp.lt.s32.totalorder %s194_s8, %s194_s8 }
  0x2b   :  { %v67_v19 = vmul.f32 %v46_v15, %v46_v15  ;;  %v71_v20 = vadd.f32 %v65_v11, %v63_v8  ;;  %211 = vmatpush1.bf16.msra.mxu0 %v210_v12  ;;  %218 = vmatpush1.bf16.msra.mxu1 %v210_v12  ;;  %v69_v21 = vmul.f32 %v48_v16, %v48_v16  ;;  %p281_p2 = scmp.ne.s32.totalorder %s194_s8, %s280_s9  ;;  %p286_p4 = scmp.lt.s32.totalorder %s280_s9, %s280_s9 }
  0x2c   :  { %v214_v22 = vpack.c.bf16 %v48_v16, %v46_v15  ;;  %v81_v24 = vadd.f32 %v80_v17, %v68_v13  ;;  %213 = vmatprep.subr.bf16.mxu0 %v212_v18  ;;  %217 = vmatprep.subr.bf16.mxu1 %v212_v18  ;;  %v50_v26 = vmul.f32 %v40_v23, %v40_v23 }
  0x2d   :  { %v72_v27 = vadd.f32 %v71_v20, %v67_v19  ;;  %v51_v28 = vmul.f32 %v41_v25, %v41_v25  ;;  %p287_p5 = por %p286_p4, %p285_p3 }
  0x2e   :  { %v82_v29 = vadd.f32 %v81_v24, %v70_v14  ;;  %v53_v30 = vsel %vm52_vm0, %v50_v26, 0.0 }
  0x2f   :  { %v73_v31 = vadd.f32 %v72_v27, %v69_v21  ;;  %215 = vmatpush1.bf16.msra.mxu0 %v214_v22  ;;  %219 = vmatpush1.bf16.msra.mxu1 %v214_v22  ;;  %v56_v32 = vsel %vm52_vm0, %v51_v28, 0.0  ;;  %p288_p6 = pnand %p287_p5, %p281_p2 }
  0x30   :  { %54 = vadd.xlane.f32.xlu0 %v53_v30  ;;  %v83_v34 = vrot.slane %v82_v29, 4 }
  0x31   :  { %v74_v33 = vrot.slane %v73_v31, 4 }
  0x32   :  { %206 = vmatmul.mubr.msk.f32.vlgmr.msra.gmra.mrb[0].mxu0 %vm52_vm0, %v40_v23  ;;  %207 = vmatmul.mubr.msk.f32.vlgmr.msra.gmra.mrb[0].mxu1 %vm52_vm0, %v41_v25  ;;  %v84_v36 = vadd.f32 %v83_v34, %v82_v29 }
  0x33   :  { %v75_v35 = vadd.f32 %v74_v33, %v73_v31 }
  0x34   :  { %57 = vadd.xlane.f32.xlu0 %v56_v32  ;;  %v85_v38 = vrot.slane %v84_v36, 2 }
  0x35   :  { %v76_v37 = vrot.slane %v75_v35, 2 }
  0x36   :  { %v86_v40 = vadd.f32 %v85_v38, %v84_v36 }
  0x37   :  { %v77_v39 = vadd.f32 %v76_v37, %v75_v35 }
  0x38   :  { %v87_v43 = vrot.slane %v86_v40, 1 }
  0x39   :  { %v78_v42 = vrot.slane %v77_v39, 1 }
  0x3a   :  { %v88_v46 = vadd.f32 %v87_v43, %v86_v40 }
  0x3b   :  { %v79_v44 = vadd.f32 %v78_v42, %v77_v39 }
  0x3c   :  { %v90_v50 = vmax.f32 %v88_v46, 1e-24 }
  0x3d   :  { %v89_v48 = vmax.f32 %v79_v44, 1e-24 }
  0xbd   :  { %v55_v41 = vpop.xlane.xlu0 %54 }
  0xbe   :  { %v59_v49 = vmax.f32 %v55_v41, 1e-24 }
  0xc1   :  { %v58_v45 = vpop.xlane.xlu0 %57 }
  0xc2   :  { %v60_v47 = vmax.f32 %v58_v45, 1e-24 }
  0xc4   :  { %228 = vrsqrt.f32 %v60_v47 }
  0xc5   :  { %230 = vrsqrt.f32 %v89_v48 }
  0xc6   :  { %232 = vrsqrt.f32 %v59_v49 }
  0xc7   :  { %234 = vrsqrt.f32 %v90_v50 }
  0xce   :  { %v229_v51 = vpop.eup %228 }
  0xcf   :  { %v231_v52 = vpop.eup %230 }
  0xd0   :  { %v233_v53 = vpop.eup %232 }
  0xd1   :  { %v235_v56 = vpop.eup %234 }
 0x105   :  { %v165_v54 = vpop.f32.mrb[0].mxu0  ;;  %v171_v55 = vpop.f32.mrb[0].mxu1 }
 0x106   :  { %v176_v57 = vmul.f32 %v233_v53, %v165_v54  ;;  %v178_v58 = vmul.f32 %v229_v51, %v171_v55  ;;  %v167_v59 = vpop.f32.mrb[1].mxu0  ;;  %v173_v60 = vpop.f32.mrb[1].mxu1 }
 0x107   :  { %v177_v61 = vmul.f32 %v233_v53, %v167_v59  ;;  %v179_v62 = vmul.f32 %v229_v51, %v173_v60 }
 0x108   :  { %v180_v63 = vmul.f32 %v231_v52, %v176_v57  ;;  %v182_v0 = vmul.f32 %v231_v52, %v178_v58 }
 0x109   :  { %v181_v1 = vmul.f32 %v235_v56, %v177_v61  ;;  %v183_v2 = vmul.f32 %v235_v56, %v179_v62 }
 0x10a   :  { %184 = vst [vmem:[#allocation7] sm:$0xff] %v180_v63  ;;  %186 = vst [vmem:[#allocation7 + $0x10] sm:$0xff] %v182_v0 }
 0x10b   :  { %185 = vst [vmem:[#allocation7 + $0x8] sm:$0xff] %v181_v1  ;;  %187 = vst [vmem:[#allocation7 + $0x18] sm:$0xff] %v183_v2 }
 0x10c   :  { %291 = shalt.err (!%p288_p6)
}
 0x10d   :  { %s292_s12 = scalar_lea.hbm %s375_s2, 512 }
 0x10e   :  { %p293_p7 = scmp.ne.s32.totalorder %s375_s2, %s292_s12  ;;  %p296_p8 = scmp.lt.u32.totalorder %s292_s12, %s375_s2 }
 0x110   :  { %p298_p9 = pnand %p296_p8, %p293_p7 }
 0x112   :  { %301 = shalt.err (!%p298_p9)
}
 0x113   :  { %199 = dma.vmem_to_hbm [thread:$0]  %s194_s8, 512, %s375_s2, [#allocation4], %s312_s0, %s312_s0, %s313_s5  }
 0x114   :  { %306 = dma.done.wait [#allocation4], 512  }
 0x115   :  { %307 = vsyncadd [#allocation4], 4294966784 }
 0x116   :  { %203 = vsyncpa [#allocation3], 1 }
 0x117   :  { %204 = vsyncpa [#allocation6], 1 }
 0x118   :  { %205 = vsyncpa [#allocation4], 1 }

</bundles_post_ra>
